<compile_context>
chip_gen: v7x
topology: tpu7x:2x2x1
jax: 0.10.0
libtpu: 0.0.40
codegen_flags: <defaults>
</compile_context>

<pallas_src>
import functools

import jax
import jax.numpy as jnp
from jax import lax
from jax.experimental import pallas as pl
from jax.experimental.pallas import tpu as pltpu


# ---------------------------------------------------------------------------
# Helpers
# ---------------------------------------------------------------------------
def _layernorm(x, w, b, eps=1e-5):
    mu = jnp.mean(x, axis=-1, keepdims=True)
    var = jnp.mean((x - mu) ** 2, axis=-1, keepdims=True)
    return (x - mu) * lax.rsqrt(var + eps) * w + b


def _vmem_limit_bytes():
    """Per-generation VMEM budget: ~80% of physical capacity (102 MiB on
    v5e/v6e, 51 MiB on v7x); conservative 64 MiB-based fallback otherwise."""
    cap = 64 * 1024 * 1024
    try:
        info = pltpu.get_tpu_info()
        cap = int(getattr(info, "vmem_capacity_bytes", cap) or cap)
    except Exception:
        pass
    return max(32 * 1024 * 1024, int(0.8 * cap))


# ---------------------------------------------------------------------------
# Kernel 1: LayerNorm0 + fused QKV projection (row-tiled)
# ---------------------------------------------------------------------------
def ln_qkv_kernel(x_ref, ln0w_ref, ln0b_ref, winT_ref, bin_ref,
                  xn_ref, q_ref, k_ref, v_ref, *, num_heads):
    E = x_ref.shape[-1]
    Dh = E // num_heads
    scale = 1.0 / (float(Dh) ** 0.5)

    xn = _layernorm(x_ref[...], ln0w_ref[...], ln0b_ref[...])          # f32 (TQ, E)
    qkv = jnp.dot(xn.astype(jnp.bfloat16), winT_ref[...],
                  preferred_element_type=jnp.float32) + bin_ref[...]   # (TQ, 3E)

    xn_ref[...] = xn
    q_ref[...] = (qkv[:, 0 * E:1 * E] * scale).astype(jnp.bfloat16)    # pre-scaled q
    k_ref[...] = qkv[:, 1 * E:2 * E].astype(jnp.bfloat16)
    v_ref[...] = qkv[:, 2 * E:3 * E].astype(jnp.bfloat16)


# ---------------------------------------------------------------------------
# Kernel 2: attention (query-tiled) + out-proj + residual + LN1 + MLP
# ---------------------------------------------------------------------------
def attn_mlp_kernel(xn_ref, q_ref, k_ref, v_ref,
                    woT_ref, bo_ref, ln1w_ref, ln1b_ref,
                    w1T_ref, b1_ref, w2T_ref, b2_ref,
                    out_ref, slab_ref, *, num_heads, q_tile):
    TQ, E = xn_ref.shape
    S = k_ref.shape[0]
    H = num_heads
    Dh = E // H

    q_start = pl.program_id(1) * q_tile

    # Causal mask for this query tile, built once as an additive f32 bias.
    row = q_start + lax.broadcasted_iota(jnp.int32, (TQ, S), 0)
    col = lax.broadcasted_iota(jnp.int32, (TQ, S), 1)
    bias = jnp.where(col > row, jnp.float32(-1e30), jnp.float32(0.0))

    q = q_ref[...]   # (TQ, E) bf16, pre-scaled by 1/sqrt(Dh)
    k = k_ref[...]   # (S, E)  bf16
    v = v_ref[...]   # (S, E)  bf16

    # Per-head attention; PV results land in a (TQ, E) bf16 slab at static lane
    # offsets so the output projection is a single K=E matmul afterwards.
    for h in range(H):  # static, small
        sl = slice(h * Dh, (h + 1) * Dh)
        # q @ k^T without transposing k (contract last dims)
        sc = lax.dot_general(q[:, sl], k[:, sl], (((1,), (1,)), ((), ())),
                             preferred_element_type=jnp.float32)       # (TQ, S)
        sc = sc + bias
        m = jnp.max(sc, axis=-1, keepdims=True)
        p = jnp.exp(sc - m)                                            # unnormalized
        denom = jnp.sum(p, axis=-1, keepdims=True)
        ho = jnp.dot(p.astype(jnp.bfloat16), v[:, sl],
                     preferred_element_type=jnp.float32)               # (TQ, Dh)
        # fold softmax normalization AFTER PV: TQ*Dh multiplies instead of TQ*S
        ho = ho * pl.reciprocal(denom, approx=True)
        slab_ref[:, sl] = ho.astype(jnp.bfloat16)

    # Single merged output projection (K = E -> full MXU depth)
    attn = jnp.dot(slab_ref[...], woT_ref[...],
                   preferred_element_type=jnp.float32) + bo_ref[...]

    # residual 1 + LayerNorm 1 (f32)
    x1 = xn_ref[...] + attn
    x2 = _layernorm(x1, ln1w_ref[...], ln1b_ref[...])

    # MLP: E -> 4E -> GELU(exact erf) -> E
    hdn = jnp.dot(x2.astype(jnp.bfloat16), w1T_ref[...],
                  preferred_element_type=jnp.float32) + b1_ref[...]
    hdn = jax.nn.gelu(hdn, approximate=False)
    mlp = jnp.dot(hdn.astype(jnp.bfloat16), w2T_ref[...],
                  preferred_element_type=jnp.float32) + b2_ref[...]

    out_ref[...] = x2 + mlp


# ---------------------------------------------------------------------------
# Wrappers
# ---------------------------------------------------------------------------
def block_forward_bse(x_bse, params, num_heads, *, q_tile=256):
    """Batch-major entry point: x_bse is (B, S, E) float32."""
    B, S, E = x_bse.shape
    F = params["w1"].shape[0]  # 4E
    assert E % num_heads == 0

    # Query-tile size: use q_tile when it evenly tiles S, otherwise no tiling.
    if S % q_tile == 0 and q_tile % 8 == 0 and q_tile < S:
        TQ = q_tile
    else:
        TQ = S
    n_q = S // TQ

    # One-time XLA-side transposes + bf16 cast of weights (biases stay f32).
    winT = params["w_in"].T.astype(jnp.bfloat16)  # (E, 3E)
    woT = params["w_o"].T.astype(jnp.bfloat16)    # (E, E)
    w1T = params["w1"].T.astype(jnp.bfloat16)     # (E, 4E)
    w2T = params["w2"].T.astype(jnp.bfloat16)     # (4E, E)

    vmem_limit = _vmem_limit_bytes()

    def const_spec(shape):
        # Grid-invariant constants: single-buffered (no pointless double-buffering).
        return pl.BlockSpec(shape, lambda b, r: (0, 0), pipeline_mode=pl.Buffered(1))

    def tile_spec():
        return pl.BlockSpec((None, TQ, E), lambda b, r: (b, r, 0))

    # ---- pass 1: LN0 + QKV -------------------------------------------------
    qkv_cost = pl.CostEstimate(
        flops=int(6 * B * S * E * E),
        transcendentals=int(B * S),
        bytes_accessed=int(B * S * E * 4 + (3 * E * E) * 2 + 4 * E * 4
                           + B * S * E * (4 + 3 * 2)),
    )
    xn, q, k, v = pl.pallas_call(
        functools.partial(ln_qkv_kernel, num_heads=num_heads),
        out_shape=(
            jax.ShapeDtypeStruct((B, S, E), jnp.float32),    # xn
            jax.ShapeDtypeStruct((B, S, E), jnp.bfloat16),   # q (pre-scaled)
            jax.ShapeDtypeStruct((B, S, E), jnp.bfloat16),   # k
            jax.ShapeDtypeStruct((B, S, E), jnp.bfloat16),   # v
        ),
        grid=(B, n_q),
        in_specs=[
            tile_spec(),               # x
            const_spec((1, E)),        # ln0_w
            const_spec((1, E)),        # ln0_b
            const_spec((E, 3 * E)),    # in_proj_weight^T (bf16)
            const_spec((1, 3 * E)),    # in_proj_bias
        ],
        out_specs=(tile_spec(), tile_spec(), tile_spec(), tile_spec()),
        compiler_params=pltpu.CompilerParams(
            dimension_semantics=("parallel", "parallel"),
            vmem_limit_bytes=vmem_limit,
        ),
        cost_estimate=qkv_cost,
    )(
        x_bse,
        params["ln0_w"].reshape(1, E), params["ln0_b"].reshape(1, E),
        winT, params["b_in"].reshape(1, 3 * E),
    )

    # ---- pass 2: attention + out-proj + residual + LN1 + MLP ----------------
    weight_bytes = 2 * (E * E + 2 * E * F) + 4 * (4 * E + F)
    attn_cost = pl.CostEstimate(
        flops=int(B * (4 * S * S * E + 2 * S * E * E + 4 * S * E * F)),
        transcendentals=int(B * (num_heads * S * S + S * F + 2 * S)),
        bytes_accessed=int(B * S * E * (4 + 3 * 2) + weight_bytes + B * S * E * 4),
    )
    out_bse = pl.pallas_call(
        functools.partial(attn_mlp_kernel, num_heads=num_heads, q_tile=TQ),
        out_shape=jax.ShapeDtypeStruct((B, S, E), jnp.float32),
        grid=(B, n_q),
        in_specs=[
            tile_spec(),                                            # xn  (TQ, E)
            pl.BlockSpec((None, TQ, E), lambda b, r: (b, r, 0)),    # q   (TQ, E)
            pl.BlockSpec((None, S, E), lambda b, r: (b, 0, 0)),     # k   (S, E), resident per b
            pl.BlockSpec((None, S, E), lambda b, r: (b, 0, 0)),     # v   (S, E), resident per b
            const_spec((E, E)),        # out_proj.weight^T (bf16)
            const_spec((1, E)),        # out_proj.bias
            const_spec((1, E)),        # ln1_w
            const_spec((1, E)),        # ln1_b
            const_spec((E, F)),        # mlp.0.weight^T (bf16)
            const_spec((1, F)),        # mlp.0.bias
            const_spec((F, E)),        # mlp.2.weight^T (bf16)
            const_spec((1, E)),        # mlp.2.bias
        ],
        out_specs=pl.BlockSpec((None, TQ, E), lambda b, r: (b, r, 0)),
        scratch_shapes=[pltpu.VMEM((TQ, E), jnp.bfloat16)],          # per-head PV slab
        compiler_params=pltpu.CompilerParams(
            dimension_semantics=("parallel", "parallel"),
            vmem_limit_bytes=vmem_limit,
        ),
        cost_estimate=attn_cost,
    )(
        xn, q, k, v,
        woT, params["b_o"].reshape(1, E),
        params["ln1_w"].reshape(1, E), params["ln1_b"].reshape(1, E),
        w1T, params["b1"].reshape(1, F),
        w2T, params["b2"].reshape(1, E),
    )
    return out_bse


def block_forward(x_sbe, params, num_heads):
    """PyTorch-layout entry point: x_sbe is (S, B, E) float32 (seq-first), same
    as the nn.Module. Transposes once at the block boundary."""
    x_bse = jnp.transpose(x_sbe, (1, 0, 2))
    out_bse = block_forward_bse(x_bse, params, num_heads)
    return jnp.transpose(out_bse, (1, 0, 2))


# ---------------------------------------------------------------------------
# Pure-JAX f32 reference (for validation)
# ---------------------------------------------------------------------------
def ref_block(x_sbe, p, num_heads):
    S, B, E = x_sbe.shape
    H, Dh = num_heads, E // num_heads

    def ln(x, w, b):
        mu = x.mean(-1, keepdims=True)
        var = ((x - mu) ** 2).mean(-1, keepdims=True)
        return (x - mu) / jnp.sqrt(var + 1e-5) * w + b

    xn = ln(x_sbe, p["ln0_w"], p["ln0_b"])
    qkv = xn @ p["w_in"].T + p["b_in"]
    q, k, v = jnp.split(qkv, 3, axis=-1)
    sh = lambda t: t.reshape(S, B, H, Dh).transpose(1, 2, 0, 3)  # (B,H,S,Dh)
    q, k, v = sh(q), sh(k), sh(v)
    sc = jnp.einsum("bhsd,bhtd->bhst", q, k) / jnp.sqrt(float(Dh))
    mask = jnp.triu(jnp.ones((S, S), bool), k=1)
    sc = jnp.where(mask, -jnp.inf, sc)
    pw = jax.nn.softmax(sc, axis=-1)
    a = jnp.einsum("bhst,bhtd->bhsd", pw, v).transpose(2, 0, 1, 3).reshape(S, B, E)
    a = a @ p["w_o"].T + p["b_o"]
    x1 = xn + a
    x2 = ln(x1, p["ln1_w"], p["ln1_b"])
    m = jax.nn.gelu(x2 @ p["w1"].T + p["b1"], approximate=False) @ p["w2"].T + p["b2"]
    return x2 + m


# ---------------------------------------------------------------------------
# Deterministic parameter init + driver
# ---------------------------------------------------------------------------
def init_params(key, emb_dim, expansion=4):
    E, F = emb_dim, emb_dim * expansion
    ks = jax.random.split(key, 8)
    n = lambda k, shape, s=0.02: s * jax.random.normal(k, shape, jnp.float32)
    return {
        "ln0_w": jnp.ones((E,), jnp.float32),
        "ln0_b": jnp.zeros((E,), jnp.float32),
        "w_in": n(ks[0], (3 * E, E)),
        "b_in": n(ks[1], (3 * E,), 0.01),
        "w_o": n(ks[2], (E, E)),
        "b_o": n(ks[3], (E,), 0.01),
        "ln1_w": jnp.ones((E,), jnp.float32),
        "ln1_b": jnp.zeros((E,), jnp.float32),
        "w1": n(ks[4], (F, E)),
        "b1": n(ks[5], (F,), 0.01),
        "w2": n(ks[6], (E, F)),
        "b2": n(ks[7], (E,), 0.01),
    }


if __name__ == "__main__":
    # NOTE: real configs should keep E (and ideally Dh) a multiple of 128 to
    # avoid lane-sparse vregs; the demo shape just exercises correctness.
    SEQ, BATCH, EMB, HEADS = 8, 2, 32, 4

    key = jax.random.PRNGKey(0)
    kx, kp = jax.random.split(key)
    x = jax.random.normal(kx, (SEQ, BATCH, EMB), jnp.float32)  # (S, B, E) seq-first
    params = init_params(kp, EMB)

    out = block_forward(x, params, HEADS)
    out = jax.block_until_ready(out)

    ref = ref_block(x, params, HEADS)
    assert out.shape == (SEQ, BATCH, EMB)
    # bf16 matmul operands (f32 accumulation) + approx reciprocal -> loosened tol
    max_err = jnp.max(jnp.abs(out - ref))
    assert jnp.allclose(out, ref, rtol=2e-2, atol=2e-2), f"max abs err {max_err}"
    print("KERNEL_OK")
</pallas_src>

<mosaic_0001>
module attributes {stable_mosaic.version = 11 : i64} {
  func.func @ln_qkv_kernel(%arg0: i32, %arg1: i32, %arg2: memref<1x8x32xf32, #tpu.memory_space<vmem>>, %arg3: memref<1x32xf32, #tpu.memory_space<vmem>>, %arg4: memref<1x32xf32, #tpu.memory_space<vmem>>, %arg5: memref<32x96xbf16, #tpu.memory_space<vmem>>, %arg6: memref<1x96xf32, #tpu.memory_space<vmem>>, %arg7: memref<1x8x32xf32, #tpu.memory_space<vmem>>, %arg8: memref<1x8x32xbf16, #tpu.memory_space<vmem>>, %arg9: memref<1x8x32xbf16, #tpu.memory_space<vmem>>, %arg10: memref<1x8x32xbf16, #tpu.memory_space<vmem>>) attributes {dimension_semantics = [#tpu.dimension_semantics<parallel>, #tpu.dimension_semantics<parallel>], iteration_bounds = array<i64: 2, 1>, scalar_prefetch = 0 : i64, scratch_operands = 0 : i64, tpu.core_type = #tpu.core_type<tc>, window_params = [{transform_indices = @transform_0, window_bounds = array<i64: 1, 8, 32>}, {pipeline_mode = #tpu.pipeline_mode<synchronous>, transform_indices = @transform_1, window_bounds = array<i64: 1, 32>}, {pipeline_mode = #tpu.pipeline_mode<synchronous>, transform_indices = @transform_2, window_bounds = array<i64: 1, 32>}, {pipeline_mode = #tpu.pipeline_mode<synchronous>, transform_indices = @transform_3, window_bounds = array<i64: 32, 96>}, {pipeline_mode = #tpu.pipeline_mode<synchronous>, transform_indices = @transform_4, window_bounds = array<i64: 1, 96>}, {transform_indices = @transform_5, window_bounds = array<i64: 1, 8, 32>}, {transform_indices = @transform_6, window_bounds = array<i64: 1, 8, 32>}, {transform_indices = @transform_7, window_bounds = array<i64: 1, 8, 32>}, {transform_indices = @transform_8, window_bounds = array<i64: 1, 8, 32>}]} {
    %c0 = arith.constant 0 : index
    %c0_0 = arith.constant 0 : index
    %c0_1 = arith.constant 0 : index
    %0 = vector.load %arg2[%c0, %c0_0, %c0_1] : memref<1x8x32xf32, #tpu.memory_space<vmem>>, vector<1x8x32xf32>
    %1 = vector.shape_cast %0 : vector<1x8x32xf32> to vector<8x32xf32>
    %c0_2 = arith.constant 0 : index
    %c0_3 = arith.constant 0 : index
    %2 = vector.load %arg3[%c0_2, %c0_3] : memref<1x32xf32, #tpu.memory_space<vmem>>, vector<1x32xf32>
    %c0_4 = arith.constant 0 : index
    %c0_5 = arith.constant 0 : index
    %3 = vector.load %arg4[%c0_4, %c0_5] : memref<1x32xf32, #tpu.memory_space<vmem>>, vector<1x32xf32>
    %cst = arith.constant dense<0.000000e+00> : vector<8xf32>
    %4 = vector.multi_reduction <add>, %1, %cst [1] : vector<8x32xf32> to vector<8xf32>
    %5 = vector.shape_cast %4 : vector<8xf32> to vector<8x1xf32>
    %cst_6 = arith.constant 3.200000e+01 : f32
    %6 = vector.broadcast %cst_6 : f32 to vector<8x1xf32>
    %7 = arith.divf %5, %6 : vector<8x1xf32>
    %8 = vector.broadcast %7 : vector<8x1xf32> to vector<8x32xf32>
    %9 = arith.subf %1, %8 : vector<8x32xf32>
    %10 = arith.mulf %9, %9 : vector<8x32xf32>
    %cst_7 = arith.constant dense<0.000000e+00> : vector<8xf32>
    %11 = vector.multi_reduction <add>, %10, %cst_7 [1] : vector<8x32xf32> to vector<8xf32>
    %12 = vector.shape_cast %11 : vector<8xf32> to vector<8x1xf32>
    %cst_8 = arith.constant 3.200000e+01 : f32
    %13 = vector.broadcast %cst_8 : f32 to vector<8x1xf32>
    %14 = arith.divf %12, %13 : vector<8x1xf32>
    %15 = vector.broadcast %7 : vector<8x1xf32> to vector<8x32xf32>
    %16 = arith.subf %1, %15 : vector<8x32xf32>
    %cst_9 = arith.constant 9.99999974E-6 : f32
    %17 = vector.broadcast %cst_9 : f32 to vector<8x1xf32>
    %18 = arith.addf %14, %17 : vector<8x1xf32>
    %19 = math.rsqrt %18 : vector<8x1xf32>
    %20 = vector.broadcast %19 : vector<8x1xf32> to vector<8x32xf32>
    %21 = arith.mulf %16, %20 : vector<8x32xf32>
    %22 = vector.broadcast %2 : vector<1x32xf32> to vector<8x32xf32>
    %23 = arith.mulf %21, %22 : vector<8x32xf32>
    %24 = vector.broadcast %3 : vector<1x32xf32> to vector<8x32xf32>
    %25 = arith.addf %23, %24 : vector<8x32xf32>
    %26 = arith.truncf %25 : vector<8x32xf32> to vector<8x32xbf16>
    %c0_10 = arith.constant 0 : index
    %c0_11 = arith.constant 0 : index
    %27 = vector.load %arg5[%c0_10, %c0_11] : memref<32x96xbf16, #tpu.memory_space<vmem>>, vector<32x96xbf16>
    %cst_12 = arith.constant dense<0.000000e+00> : vector<8x96xf32>
    %28 = tpu.matmul %26, %27, %cst_12 {dimension_numbers = #tpu.dot_dimension_numbers<[1], [0], [0], [1], [0, 0, 1, 1], [], []>} : vector<8x32xbf16>, vector<32x96xbf16>, vector<8x96xf32> -> vector<8x96xf32>
    %c0_13 = arith.constant 0 : index
    %c0_14 = arith.constant 0 : index
    %29 = vector.load %arg6[%c0_13, %c0_14] : memref<1x96xf32, #tpu.memory_space<vmem>>, vector<1x96xf32>
    %30 = vector.broadcast %29 : vector<1x96xf32> to vector<8x96xf32>
    %31 = arith.addf %28, %30 : vector<8x96xf32>
    %c0_15 = arith.constant 0 : index
    %c0_16 = arith.constant 0 : index
    %c0_17 = arith.constant 0 : index
    %32 = vector.load %arg7[%c0_15, %c0_16, %c0_17] : memref<1x8x32xf32, #tpu.memory_space<vmem>>, vector<1x8x32xf32>
    %33 = vector.shape_cast %32 : vector<1x8x32xf32> to vector<8x32xf32>
    %34 = vector.shape_cast %25 : vector<8x32xf32> to vector<1x8x32xf32>
    tpu.vector_store %arg7[%c0_15, %c0_16, %c0_17], %34 {strides = array<i32>} : memref<1x8x32xf32, #tpu.memory_space<vmem>>, vector<1x8x32xf32>,
    %35 = vector.extract_strided_slice %31 {offsets = [0, 0], sizes = [8, 32], strides = [1, 1]} : vector<8x96xf32> to vector<8x32xf32>
    %cst_18 = arith.constant 0.353553385 : f32
    %36 = vector.broadcast %cst_18 : f32 to vector<8x32xf32>
    %37 = arith.mulf %35, %36 : vector<8x32xf32>
    %38 = arith.truncf %37 : vector<8x32xf32> to vector<8x32xbf16>
    %c0_19 = arith.constant 0 : index
    %c0_20 = arith.constant 0 : index
    %c0_21 = arith.constant 0 : index
    %39 = vector.load %arg8[%c0_19, %c0_20, %c0_21] : memref<1x8x32xbf16, #tpu.memory_space<vmem>>, vector<1x8x32xbf16>
    %40 = vector.shape_cast %39 : vector<1x8x32xbf16> to vector<8x32xbf16>
    %41 = vector.shape_cast %38 : vector<8x32xbf16> to vector<1x8x32xbf16>
    tpu.vector_store %arg8[%c0_19, %c0_20, %c0_21], %41 {strides = array<i32>} : memref<1x8x32xbf16, #tpu.memory_space<vmem>>, vector<1x8x32xbf16>,
    %42 = vector.extract_strided_slice %31 {offsets = [0, 32], sizes = [8, 32], strides = [1, 1]} : vector<8x96xf32> to vector<8x32xf32>
    %43 = arith.truncf %42 : vector<8x32xf32> to vector<8x32xbf16>
    %c0_22 = arith.constant 0 : index
    %c0_23 = arith.constant 0 : index
    %c0_24 = arith.constant 0 : index
    %44 = vector.load %arg9[%c0_22, %c0_23, %c0_24] : memref<1x8x32xbf16, #tpu.memory_space<vmem>>, vector<1x8x32xbf16>
    %45 = vector.shape_cast %44 : vector<1x8x32xbf16> to vector<8x32xbf16>
    %46 = vector.shape_cast %43 : vector<8x32xbf16> to vector<1x8x32xbf16>
    tpu.vector_store %arg9[%c0_22, %c0_23, %c0_24], %46 {strides = array<i32>} : memref<1x8x32xbf16, #tpu.memory_space<vmem>>, vector<1x8x32xbf16>,
    %47 = vector.extract_strided_slice %31 {offsets = [0, 64], sizes = [8, 32], strides = [1, 1]} : vector<8x96xf32> to vector<8x32xf32>
    %48 = arith.truncf %47 : vector<8x32xf32> to vector<8x32xbf16>
    %c0_25 = arith.constant 0 : index
    %c0_26 = arith.constant 0 : index
    %c0_27 = arith.constant 0 : index
    %49 = vector.load %arg10[%c0_25, %c0_26, %c0_27] : memref<1x8x32xbf16, #tpu.memory_space<vmem>>, vector<1x8x32xbf16>
    %50 = vector.shape_cast %49 : vector<1x8x32xbf16> to vector<8x32xbf16>
    %51 = vector.shape_cast %48 : vector<8x32xbf16> to vector<1x8x32xbf16>
    tpu.vector_store %arg10[%c0_25, %c0_26, %c0_27], %51 {strides = array<i32>} : memref<1x8x32xbf16, #tpu.memory_space<vmem>>, vector<1x8x32xbf16>,
    return
  }
  func.func @transform_0(%arg0: i32, %arg1: i32) -> (i32, i32, i32) {
    %c0_i32 = arith.constant 0 : i32
    %c0_i32_0 = arith.constant 0 : i32
    return %arg0, %arg1, %c0_i32 : i32, i32, i32
  }
  func.func @transform_1(%arg0: i32, %arg1: i32) -> (i32, i32) {
    %c0_i32 = arith.constant 0 : i32
    %c0_i32_0 = arith.constant 0 : i32
    %c0_i32_1 = arith.constant 0 : i32
    return %c0_i32, %c0_i32_0 : i32, i32
  }
  func.func @transform_2(%arg0: i32, %arg1: i32) -> (i32, i32) {
    %c0_i32 = arith.constant 0 : i32
    %c0_i32_0 = arith.constant 0 : i32
    %c0_i32_1 = arith.constant 0 : i32
    return %c0_i32, %c0_i32_0 : i32, i32
  }
  func.func @transform_3(%arg0: i32, %arg1: i32) -> (i32, i32) {
    %c0_i32 = arith.constant 0 : i32
    %c0_i32_0 = arith.constant 0 : i32
    %c0_i32_1 = arith.constant 0 : i32
    return %c0_i32, %c0_i32_0 : i32, i32
  }
  func.func @transform_4(%arg0: i32, %arg1: i32) -> (i32, i32) {
    %c0_i32 = arith.constant 0 : i32
    %c0_i32_0 = arith.constant 0 : i32
    %c0_i32_1 = arith.constant 0 : i32
    return %c0_i32, %c0_i32_0 : i32, i32
  }
  func.func @transform_5(%arg0: i32, %arg1: i32) -> (i32, i32, i32) {
    %c0_i32 = arith.constant 0 : i32
    %c0_i32_0 = arith.constant 0 : i32
    return %arg0, %arg1, %c0_i32 : i32, i32, i32
  }
  func.func @transform_6(%arg0: i32, %arg1: i32) -> (i32, i32, i32) {
    %c0_i32 = arith.constant 0 : i32
    %c0_i32_0 = arith.constant 0 : i32
    return %arg0, %arg1, %c0_i32 : i32, i32, i32
  }
  func.func @transform_7(%arg0: i32, %arg1: i32) -> (i32, i32, i32) {
    %c0_i32 = arith.constant 0 : i32
    %c0_i32_0 = arith.constant 0 : i32
    return %arg0, %arg1, %c0_i32 : i32, i32, i32
  }
  func.func @transform_8(%arg0: i32, %arg1: i32) -> (i32, i32, i32) {
    %c0_i32 = arith.constant 0 : i32
    %c0_i32_0 = arith.constant 0 : i32
    return %arg0, %arg1, %c0_i32 : i32, i32, i32
  }
}

</mosaic_0001>

<bundles_post_ra>
// kernel: tpu_custom_call.1
= control target key start
LH: loop header
LB: loop body
LE: loop exit
PB: predicated region body
PF: predicated region fallthrough
CT: control target
= control target key end

     0   :  { %s1541_s0 = inlined_call_operand.hbm [shape: f32[2,8,32], index: 0, kind: input, shape index: {}]   ;;  %s1542_s1 = inlined_call_operand.vmem [shape: f32[1,32], index: 1, kind: input, shape index: {}]   ;;  %s1543_s2 = inlined_call_operand.vmem [shape: f32[1,32], index: 2, kind: input, shape index: {}]   ;;  %s1544_s3 = inlined_call_operand.hbm [shape: bf16[32,96], index: 3, kind: input, shape index: {}]   ;;  %s1545_s4 = inlined_call_operand.vmem [shape: f32[1,96], index: 4, kind: input, shape index: {}]   ;;  %s1546_s5 = inlined_call_operand.hbm [shape: f32[2,8,32], index: 5, kind: output, shape index: {0}]   ;;  %s1547_s6 = inlined_call_operand.hbm [shape: bf16[2,8,32], index: 6, kind: output, shape index: {1}]   ;;  %s1548_s7 = inlined_call_operand.hbm [shape: bf16[2,8,32], index: 7, kind: output, shape index: {2}]   ;;  %s1549_s8 = inlined_call_operand.hbm [shape: bf16[2,8,32], index: 8, kind: output, shape index: {3}]  }
   0x1   :  { %1556 = sst [smem:[#allocation20_spill]] %s1544_s3 }
   0x2   :  { %14 = vsyncpa [#allocation3], 0 }
   0x3   :  { %16 = vsyncpa [#allocation3 + $0x1], 0 }
   0x4   :  { %17 = vsyncpa [#allocation6], 0 }
   0x5   :  { %18 = vsyncpa [#allocation4], 0 }
   0x6   :  { %20 = vsyncpa [#allocation4 + $0x1], 0 }
   0x7   :  { %21 = vsyncpa [#allocation9], 0 }
   0x8   :  { %23 = vsyncpa [#allocation9 + $0x1], 0 }
   0x9   :  { %24 = vsyncpa [#allocation12], 0 }
   0xa   :  { %26 = vsyncpa [#allocation12 + $0x1], 0  ;;  %s1198_s27 = smov 0   ;;  %s1200_s28 = smov 0  }
   0xb   :  { %s1202_s29 = smov 0   ;;  %s1204_s30 = smov 0  }
   0xc   :  { %s1206_s9 = smov 0   ;;  %s1208_s10 = smov 0  }
   0xd LB: > { %s1229_s11 = sadd.s32 4294967295, %s1139_s10   ;;  %s1553_s12 = sadd.s32 4294967294, %s1139_s10   ;;  %s1139_s10 = sphi %s1208_s10, %s32_s10   ;;  %s1135_s9 = sphi %s1206_s9, %s1581_s9   ;;  %s1131_s30 = sphi %s1204_s30, %s1580_s30   ;;  %s1127_s29 = sphi %s1202_s29, %s1579_s29   ;;  %s1123_s28 = sphi %s1200_s28, %s1578_s28   ;;  %s1119_s27 = sphi %s1198_s27, %s1577_s27  }
   0xe   : > { %p66_p0 = scmp.ne.s32.totalorder %s1123_s28, %s1119_s27  ;;  %p1550_p1 = scmp.eq.s32.totalorder %s1229_s11, 0 }
   0xf   : > { %p182_p3 = scmp.eq.s32.totalorder %s1553_s12, 1  ;;  %p764_p5 = scmp.ge.s32.totalorder %s1139_s10, 1 }
  0x10   : > { %p1240_p4 = por %p1550_p1, %p66_p0  ;;  %p273_p7 = scmp.lt.s32.totalorder %s1139_s10, 3 }
  0x11   : > { %p1245_p6 = por %p182_p3, %p66_p0  ;;  %s1141_s16 = smov [#allocation5]  }
  0x12   : > { %s1557_s13 = scalar_select %p1240_p4, 1, 0 }
  0x13   : > { %s1558_s14 = scalar_select %p1245_p6, 1, 0 }
  0x14   : > { %p1250_p8 = pnand %p764_p5, %p273_p7  ;;  %s291_s17 = sshll.u32 %s1141_s16, 4  ;;  %s292_s17 = int_to_ptr.vmem [resolvable:$true] %s291_s17 }
  0x15   : > { %1559 = sst [smem:[#allocation18_spill]] %s1558_s14  ;;  %s44_s19 = sadd.s32 1, %s1135_s9 }
  0x16   : > { %s1560_s15 = scalar_select %p1250_p8, 1, 0 }
  0x17   : > { %p819_p9 = pneg %p1250_p8  ;;  %s1562_s3 = sld [smem:[#allocation20_spill]] }
  0x19   : > { %p1259_p11 = pnand %p819_p9, %p1550_p1 }
  0x1b   : > { %p905_p13 = pneg %p1259_p11 }
  0x1d   : > { %s903_s22 = scalar_lea.hbm %s1562_s3, 256 }
  0x1e   : > { %p904_p12 = scmp.ne.s32.totalorder %s1562_s3, %s903_s22  ;;  %p910_p5 = scmp.lt.u32.totalorder %s903_s22, %s1562_s3 }
  0x20   : > { %p906_p0 = pnand %p905_p13, %p904_p12 }
  0x22   : > { %p907_p3 = pneg %p906_p0 }
  0x24   : > { %p912_p7 = pnand %p910_p5, %p907_p3 }
  0x26   : > { %915 = shalt.err (!%p912_p7)
}
  0x27   : > { %s916_s16 = scalar_lea.vmem %s292_s17, 256  ;;  %p924_p2 = scmp.lt.s32.totalorder %s292_s17, %s292_s17 }
  0x28   : > { %p917_p9 = scmp.ne.s32.totalorder %s292_s17, %s916_s16  ;;  %p925_p6 = scmp.lt.s32.totalorder %s916_s16, %s916_s16 }
  0x2a   : > { %p919_p10 = pnand %p917_p9, %p905_p13  ;;  %p926_p4 = por %p925_p6, %p924_p2 }
  0x2c   : > { %p920_p1 = pneg %p919_p10 }
  0x2e   : > { %p927_p8 = pnand %p926_p4, %p920_p1 }
  0x30   : > { %930 = shalt.err (!%p927_p8)
}
  0x31   : > { %s1142_s20 = smov 64   ;;  %s1143_s21 = smov 4  }
  0x32   : > { %822 = dma.hbm_to_vmem [thread:$0]  (!%p1259_p11), %s1562_s3, 256, %s292_s17, [#allocation6], %s1142_s20, %s1142_s20, %s1143_s21  }
  0x33   : > { %p46_p1 = scmp.ge.s32.totalorder %s44_s19, 2  ;;  %s53_s24 = sadd.s32 1, %s1127_s29 }
  0x34   : > { %p60_p2 = scmp.ne.s32.totalorder %s1127_s29, %s1123_s28  ;;  %p61_p4 = scmp.eq.s32.totalorder %s1139_s10, 0 }
  0x35   : > { %s1583_s19 = smov (%p46_p1, %s44_s19), 0  ;;  %p1565_p8 = scmp.eq.s32.totalorder %s1229_s11, 1 }
  0x36   : > { %1563 = sst [smem:[#allocation19_spill]] %s1583_s19  ;;  %p1286_p6 = por %p61_p4, %p60_p2 }
  0x37   : > { %p1292_p10 = por %p1565_p8, %p60_p2  ;;  %s48_s18 = ssub.s32 %s1135_s9, %s1583_s19 }
  0x38   : > { %p841_p12 = scmp.lt.s32.totalorder %s1139_s10, 2  ;;  %p51_p11 = scmp.eq.s32.totalorder %s48_s18, 0 }
  0x39   : > { %s308_s17 = sand.u32 1, %s1127_s29   ;;  %s768_s21 = sshll.u32 %s1135_s9, 7 }
  0x3a   : > { %s767_s16 = sshll.u32 %s308_s17, 3  ;;  %s1307_s12 = scalar_lea.hbm %s1541_s0, %s768_s21 }
  0x3b   : > { %s1301_s20 = scalar_select %p51_p11, %s1127_s29, %s53_s24  }
  0x3c   : > { %s312_s3 = scalar_lea.vmem [#allocation2], %s767_s16  ;;  %p1313_p13 = pnand %p841_p12, %p1286_p6 }
  0x3d   : > { %s320_s14 = sshll.u32 %s312_s3, 4  ;;  %s309_s24 = scalar_lea.sflag [#allocation3], %s308_s17  ;;  %s1309_s14 = int_to_ptr.vmem [resolvable:$true] %s320_s14 }
  0x3e   : > { %s931_s19 = scalar_lea.hbm %s1307_s12, 128  ;;  %p933_p3 = pneg %p1313_p13 }
  0x3f   : > { %p932_p0 = scmp.ne.s32.totalorder %s1307_s12, %s931_s19  ;;  %s936_s21 = scalar_lea.hbm %s1541_s0, 256 }
  0x40   : > { %p937_p9 = scmp.lt.u32.totalorder %s1307_s12, %s1541_s0  ;;  %p938_p1 = scmp.lt.u32.totalorder %s936_s21, %s931_s19 }
  0x41   : > { %p934_p5 = pnand %p933_p3, %p932_p0  ;;  %p940_p4 = scmp.lt.u32.totalorder %s931_s19, %s1307_s12 }
  0x42   : > { %p939_p2 = por %p938_p1, %p937_p9 }
  0x43   : > { %p935_p7 = pneg %p934_p5 }
  0x44   : > { %p941_p6 = por %p940_p4, %p939_p2 }
  0x46   : > { %p942_p8 = pnand %p941_p6, %p935_p7 }
  0x48   : > { %945 = shalt.err (!%p942_p8)
}
  0x49   : > { %s946_s17 = scalar_lea.vmem %s1309_s14, 128  ;;  %s1144_s23 = smov [#allocation2]  }
  0x4a   : > { %p947_p12 = scmp.ne.s32.totalorder %s1309_s14, %s946_s17  ;;  %s951_s16 = sshll.u32 %s1144_s23, 4  ;;  %s952_s16 = int_to_ptr.vmem [resolvable:$false] %s951_s16 }
  0x4b   : > { %s953_s3 = scalar_lea.vmem %s952_s16, 256  ;;  %p954_p5 = scmp.lt.s32.totalorder %s1309_s14, %s952_s16 }
  0x4c   : > { %p949_p11 = pnand %p947_p12, %p933_p3  ;;  %p955_p9 = scmp.lt.s32.totalorder %s953_s3, %s946_s17 }
  0x4e   : > { %p950_p0 = pneg %p949_p11  ;;  %p956_p1 = por %p955_p9, %p954_p5 }
  0x50   : > { %p957_p2 = pnand %p956_p1, %p950_p0 }
  0x52   : > { %960 = shalt.err (!%p957_p2)
}
  0x53   : > { %826 = dma.hbm_to_vmem [thread:$0]  (!%p1313_p13), %s1307_s12, 128, %s1309_s14, %s309_s24  }
  0x54   : > { %p1568_p7 = scmp.ne.s32.totalorder %s1560_s15, 0 }
  0x55   : > { %s1345_s19 = sand.u32 (!%p1568_p7), 1, %s1123_s28   ;;  %p1569_p3 = scmp.ne.s32.totalorder (!%p1568_p7), %s1557_s13, 0 }
  0x56   : > { %329 = sbr.rel (%p1568_p7) target bundleno = 794 (0x31a), region = 40  ;;  %s770_s21 = sshll.u32 (!%p1568_p7), %s1345_s19, 3 }
  0x57   : > { %s332_s25 = scalar_lea.sflag (!%p1568_p7), [#allocation3], %s1345_s19  ;;  %s335_s22 = scalar_lea.vmem (!%p1568_p7), [#allocation2], %s770_s21 }
  0x5d   : > { %1098 = dma.done.wait (%p1569_p3), %s332_s25, 128  }
  0x5e   : > { %1100 = vsyncadd (%p1569_p3), %s332_s25, 4294967168  ;;  %p1570_p13 = scmp.eq.s32.totalorder %s1229_s11, 0 }
  0x60   : > { %1102 = dma.done.wait (%p1570_p13), [#allocation6], 256   ;;  %p1571_p4 = pmov %p1570_p13 }
  0x61   : > { %vm391_vm0 = vcmask 261120   ;;  %v388_v0 = vld [vmem:[%s335_s22] sm:$0xff]  ;;  %v899_v7 = vld [vmem:[#allocation5] sm:$0xff]   ;;  %v1145_v8 = vmov 0.0   ;;  %v900_v9 = vld [vmem:[#allocation5 + $0x8] sm:$0xff]   ;;  %vm1146_vm1 = vmmov 0  }
  0x62   : > { %1104 = vsyncadd (%p1571_p4), [#allocation6], 4294967040  ;;  %v392_v1 = vsel %vm391_vm0, %v388_v0, 0.0  ;;  %797 = vmatprep.subr.bf16.mxu0 %v1145_v8  ;;  %801 = vmatprep.mubr.msk.bf16.mxu0 %vm1146_vm1, %v1145_v8  ;;  %v776_v14 = vld [vmem:[%s1542_s1] ss:$0 sm:$0xff]  ;;  %s365_s18 = scalar_lea.vmem [#allocation7], %s770_s21 }
  0x63   : > { %393 = vadd.xlane.f32.xlu0 %v392_v1  ;;  %798 = vmatpush3.bf16.msra.mxu0 %v899_v7  ;;  %v777_v16 = vld [vmem:[%s1543_s2] ss:$0 sm:$0xff]  ;;  %s1372_s24 = sshll.u32 %s1345_s19, 2  ;;  %s787_s17 = sshll.u32 %s1131_s30, 7 }
  0x64   : > { %799 = vmatprep.subr.bf16.mxu0 %v1145_v8  ;;  %v778_v20 = vld [vmem:[%s1545_s4] ss:$0 sm:$0xff]  ;;  %s1381_s22 = scalar_lea.hbm %s1546_s5, %s787_s17  ;;  %s534_s12 = sshll.u32 %s365_s18, 4  ;;  %s1383_s12 = int_to_ptr.vmem [resolvable:$true] %s534_s12 }
  0x65   : > { %s505_s21 = scalar_lea.sflag [#allocation4], %s1345_s19  ;;  %s961_s13 = scalar_lea.vmem %s1383_s12, 128 }
  0x66   : > { %p962_p6 = scmp.ne.s32.totalorder %s1383_s12, %s961_s13  ;;  %s1147_s14 = smov [#allocation7]  }
  0x67   : > { %800 = vmatpush3.bf16.msra.mxu0 %v900_v9  ;;  %s965_s15 = sshll.u32 %s1147_s14, 4  ;;  %s966_s15 = int_to_ptr.vmem [resolvable:$false] %s965_s15 }
  0x68   : > { %p963_p8 = pnand %p962_p6, %p1292_p10  ;;  %s967_s23 = scalar_lea.vmem %s966_s15, 256 }
  0x69   : > { %p968_p11 = scmp.lt.s32.totalorder %s1383_s12, %s966_s15  ;;  %p969_p0 = scmp.lt.s32.totalorder %s967_s23, %s961_s13 }
  0x6a   : > { %p964_p12 = pneg %p963_p8 }
  0x6b   : > { %p970_p5 = por %p969_p0, %p968_p11 }
  0x6d   : > { %p971_p9 = pnand %p970_p5, %p964_p12 }
  0xf0   : > { %v394_v2 = vpop.xlane.xlu0 %393 }
  0xf1   : > { %v396_v3 = vmul.f32 0.03125, %v394_v2 }
  0xf3   : > { %v397_v4 = vsub.f32 %v388_v0, %v396_v3 }
  0xf5   : > { %v398_v5 = vmul.f32 %v397_v4, %v397_v4 }
  0xf7   : > { %v399_v6 = vsel %vm391_vm0, %v398_v5, 0.0 }
  0xf8   : > { %400 = vadd.xlane.f32.xlu0 %v399_v6 }
 0x185   : > { %v401_v10 = vpop.xlane.xlu0 %400 }
 0x186   : > { %v402_v11 = vmul.f32 0.03125, %v401_v10 }
 0x188   : > { %v403_v12 = vadd.f32 1e-05, %v402_v11 }
 0x18a   : > { %901 = vrsqrt.f32 %v403_v12 }
 0x194   : > { %v902_v13 = vpop.eup %901 }
 0x195   : > { %v405_v15 = vmul.f32 %v902_v13, %v397_v4 }
 0x197   : > { %v412_v17 = vmul.f32 %v776_v14, %v405_v15 }
 0x199   : > { %v419_v18 = vadd.f32 %v777_v16, %v412_v17 }
 0x19b   : > { %v420_v19 = vpack.c.bf16 %v419_v18, %v419_v18  ;;  %487 = vst.msk [vmem:[%s365_s18] sm:$0xff] %vm391_vm0, %v419_v18 }
 0x19d   : > { %802 = vmatmul.mubr.msk.bf16.vlgmr.msra.gmra.mrb[0].mxu0 %vm391_vm0, %v420_v19 }
 0x270   : > { %v481_v21 = vpop.f32.mrb[0].mxu0 }
 0x271   : > { %974 = shalt.err (!%p971_p9)
}
 0x272   : > { %s975_s18 = scalar_lea.hbm %s1381_s22, 128  ;;  %s979_s3 = scalar_lea.hbm %s1546_s5, 256 }
 0x273   : > { %p976_p1 = scmp.ne.s32.totalorder %s1381_s22, %s975_s18  ;;  %p980_p3 = scmp.lt.u32.totalorder %s1381_s22, %s1546_s5 }
 0x274   : > { %p981_p13 = scmp.lt.u32.totalorder %s979_s3, %s975_s18  ;;  %p983_p6 = scmp.lt.u32.totalorder %s975_s18, %s1381_s22 }
 0x275   : > { %p977_p2 = pnand %p976_p1, %p1292_p10 }
 0x276   : > { %p982_p4 = por %p981_p13, %p980_p3 }
 0x277   : > { %p978_p7 = pneg %p977_p2 }
 0x278   : > { %p984_p8 = por %p983_p6, %p982_p4 }
 0x27a   : > { %p985_p12 = pnand %p984_p8, %p978_p7 }
 0x27c   : > { %988 = shalt.err (!%p985_p12)
}
 0x27d   : > { %811 = dma.vmem_to_hbm [thread:$0]  (%p1292_p10), %s1383_s12, 128, %s1381_s22, %s505_s21   ;;  %v482_v22 = vadd.f32 %v778_v20, %v481_v21  ;;  %v803_v23 = vpop.f32.mrb[1].mxu0  ;;  %vm490_vm2 = vcmask 257024  }
 0x27e   : > { %s509_s13 = sand.u32 1, %s1229_s11   ;;  %v484_v24 = vpop.f32.mrb[2].mxu0  ;;  %s1409_s15 = sshll.u32 %s1131_s30, 6 }
 0x27f   : > { %s372_s23 = scalar_lea.vmem [#allocation8], %s1372_s24  ;;  %v488_v25 = vmul.f32 0.35355338, %v482_v22  ;;  %v804_v26 = vpop.f32.mrb[3].mxu0  ;;  %v793_v27 = vpack.c.bf16 %v482_v22, %v482_v22  ;;  %s1148_s17 = smov 96  }
 0x280   : > { %s548_s18 = sshll.u32 %s372_s23, 4  ;;  %s1416_s22 = scalar_lea.hbm %s1547_s6, %s1409_s15  ;;  %s1418_s18 = int_to_ptr.vmem [resolvable:$true] %s548_s18 }
 0x281   : > { %v489_v28 = vpack.c.bf16 %v488_v25, %v488_v25  ;;  %496 = vrot.lane.b32.xlu1 %v793_v27, %s1148_s17  ;;  %s1421_s30 = scalar_lea.sflag [#allocation9], %s509_s13  ;;  %s989_s11 = scalar_lea.vmem %s1418_s18, 64 }
 0x282   : > { %p990_p11 = scmp.ne.s32.totalorder %s1418_s18, %s989_s11  ;;  %s1149_s12 = smov [#allocation8]  }
 0x283   : > { %491 = vst.msk [vmem:[%s372_s23] sm:$0xf] %vm490_vm2, %v489_v28  ;;  %s993_s21 = sshll.u32 %s1149_s12, 4  ;;  %s994_s21 = int_to_ptr.vmem [resolvable:$false] %s993_s21 }
 0x284   : > { %p991_p0 = pnand %p990_p11, %p1292_p10  ;;  %s995_s25 = scalar_lea.vmem %s994_s21, 128 }
 0x285   : > { %p996_p9 = scmp.lt.s32.totalorder %s1418_s18, %s994_s21  ;;  %p997_p1 = scmp.lt.s32.totalorder %s995_s25, %s989_s11 }
 0x286   : > { %p992_p5 = pneg %p991_p0 }
 0x287   : > { %p998_p2 = por %p997_p1, %p996_p9 }
 0x289   : > { %p999_p7 = pnand %p998_p2, %p992_p5 }
 0x28b   : > { %1002 = shalt.err (!%p999_p7)
}
 0x28c   : > { %s1003_s14 = scalar_lea.hbm %s1416_s22, 64  ;;  %s1007_s17 = scalar_lea.hbm %s1547_s6, 128 }
 0x28d   : > { %p1004_p3 = scmp.ne.s32.totalorder %s1416_s22, %s1003_s14  ;;  %p1008_p6 = scmp.lt.u32.totalorder %s1416_s22, %s1547_s6 }
 0x28e   : > { %p1009_p8 = scmp.lt.u32.totalorder %s1007_s17, %s1003_s14  ;;  %p1011_p11 = scmp.lt.u32.totalorder %s1003_s14, %s1416_s22 }
 0x28f   : > { %p1005_p13 = pnand %p1004_p3, %p1292_p10 }
 0x290   : > { %p1010_p12 = por %p1009_p8, %p1008_p6 }
 0x291   : > { %p1006_p4 = pneg %p1005_p13 }
 0x292   : > { %p1012_p0 = por %p1011_p11, %p1010_p12 }
 0x294   : > { %p1013_p5 = pnand %p1012_p0, %p1006_p4 }
 0x296   : > { %1016 = shalt.err (!%p1013_p5)
}
 0x297   : > { %812 = dma.vmem_to_hbm [thread:$0]  (%p1292_p10), %s1418_s18, 64, %s1416_s22, %s1421_s30  }
 0x298   : > { %s1150_s11 = smov 64   ;;  %s379_s12 = scalar_lea.vmem [#allocation10], %s1372_s24 }
 0x299   : > { %500 = vrot.lane.b32.xlu1 %v793_v27, %s1150_s11  ;;  %s562_s21 = sshll.u32 %s379_s12, 4  ;;  %s1450_s13 = scalar_lea.hbm %s1548_s7, %s1409_s15  ;;  %s1452_s21 = int_to_ptr.vmem [resolvable:$true] %s562_s21 }
 0x29a   : > { %s386_s23 = scalar_lea.vmem [#allocation11], %s1372_s24  ;;  %s1017_s18 = scalar_lea.vmem %s1452_s21, 64 }
 0x29b   : > { %s1457_s17 = sshll.u32 %s386_s23, 4  ;;  %p1018_p9 = scmp.ne.s32.totalorder %s1452_s21, %s1017_s18  ;;  %s1489_s17 = int_to_ptr.vmem [resolvable:$true] %s1457_s17 }
 0x29c   : > { %s1151_s22 = smov [#allocation10]  }
 0x29d   : > { %p1019_p1 = pnand %p1018_p9, %p1292_p10  ;;  %s1021_s16 = sshll.u32 %s1151_s22, 4  ;;  %s1022_s16 = int_to_ptr.vmem [resolvable:$false] %s1021_s16 }
 0x29e   : > { %s1023_s3 = scalar_lea.vmem %s1022_s16, 128  ;;  %p1024_p7 = scmp.lt.s32.totalorder %s1452_s21, %s1022_s16 }
 0x29f   : > { %p1020_p2 = pneg %p1019_p1  ;;  %p1025_p3 = scmp.lt.s32.totalorder %s1023_s3, %s1017_s18 }
 0x2a1   : > { %p1026_p13 = por %p1025_p3, %p1024_p7 }
 0x2a3   : > { %p1027_p4 = pnand %p1026_p13, %p1020_p2 }
 0x2f3   : > { %v497_v29 = vpop.permute.xlu1 %496 }
 0x2f4   : > { %499 = vst.msk [vmem:[%s379_s12] sm:$0xf] %vm490_vm2, %v497_v29 }
 0x2f5   : > { %1030 = shalt.err (!%p1027_p4)
}
 0x2f6   : > { %s1031_s11 = scalar_lea.hbm %s1450_s13, 64  ;;  %s1035_s14 = scalar_lea.hbm %s1548_s7, 128 }
 0x2f7   : > { %p1032_p6 = scmp.ne.s32.totalorder %s1450_s13, %s1031_s11  ;;  %p1036_p11 = scmp.lt.u32.totalorder %s1450_s13, %s1548_s7 }
 0x2f8   : > { %p1037_p0 = scmp.lt.u32.totalorder %s1035_s14, %s1031_s11  ;;  %p1039_p9 = scmp.lt.u32.totalorder %s1031_s11, %s1450_s13 }
 0x2f9   : > { %p1033_p8 = pnand %p1032_p6, %p1292_p10 }
 0x2fa   : > { %p1038_p5 = por %p1037_p0, %p1036_p11 }
 0x2fb   : > { %p1034_p12 = pneg %p1033_p8 }
 0x2fc   : > { %p1040_p1 = por %p1039_p9, %p1038_p5 }
 0x2fe   : > { %p1041_p2 = pnand %p1040_p1, %p1034_p12 }
 0x300   : > { %1044 = shalt.err (!%p1041_p2)
}
 0x301   : > { %813 = dma.vmem_to_hbm [thread:$0]  (%p1292_p10), %s1452_s21, 64, %s1450_s13, %s1421_s30  }
 0x302   : > { %s1486_s12 = scalar_lea.hbm %s1549_s8, %s1409_s15  ;;  %s520_s11 = scalar_lea.sflag [#allocation12], %s1345_s19 }
 0x303   : > { %s1045_s25 = scalar_lea.vmem %s1489_s17, 64  ;;  %s1152_s30 = smov [#allocation11]  }
 0x304   : > { %p1046_p7 = scmp.ne.s32.totalorder %s1489_s17, %s1045_s25  ;;  %s1049_s21 = sshll.u32 %s1152_s30, 4  ;;  %s1050_s21 = int_to_ptr.vmem [resolvable:$false] %s1049_s21 }
 0x305   : > { %s1051_s15 = scalar_lea.vmem %s1050_s21, 128  ;;  %p1052_p4 = scmp.lt.s32.totalorder %s1489_s17, %s1050_s21 }
 0x306   : > { %p1047_p3 = pnand %p1046_p7, %p1292_p10  ;;  %p1053_p6 = scmp.lt.s32.totalorder %s1051_s15, %s1045_s25 }
 0x308   : > { %p1048_p13 = pneg %p1047_p3  ;;  %p1054_p8 = por %p1053_p6, %p1052_p4 }
 0x30a   : > { %p1055_p12 = pnand %p1054_p8, %p1048_p13 }
 0x30b   : > { %v501_v30 = vpop.permute.xlu1 %500 }
 0x30c   : > { %503 = vst.msk [vmem:[%s386_s23] sm:$0xf] %vm490_vm2, %v501_v30 }
 0x30d   : > { %1058 = shalt.err (!%p1055_p12)
}
 0x30e   : > { %s1059_s19 = scalar_lea.hbm %s1486_s12, 64  ;;  %s1063_s23 = scalar_lea.hbm %s1549_s8, 128 }
 0x30f   : > { %p1060_p11 = scmp.ne.s32.totalorder %s1486_s12, %s1059_s19  ;;  %p1064_p9 = scmp.lt.u32.totalorder %s1486_s12, %s1549_s8 }
 0x310   : > { %p1065_p1 = scmp.lt.u32.totalorder %s1063_s23, %s1059_s19  ;;  %p1067_p7 = scmp.lt.u32.totalorder %s1059_s19, %s1486_s12 }
 0x311   : > { %p1061_p0 = pnand %p1060_p11, %p1292_p10 }
 0x312   : > { %p1066_p2 = por %p1065_p1, %p1064_p9 }
 0x313   : > { %p1062_p5 = pneg %p1061_p0 }
 0x314   : > { %p1068_p3 = por %p1067_p7, %p1066_p2 }
 0x316   : > { %p1069_p13 = pnand %p1068_p3, %p1062_p5 }
 0x318   : > { %1072 = shalt.err (!%p1069_p13)
}
 0x319   : > { %814 = dma.vmem_to_hbm [thread:$0]  (%p1292_p10), %s1489_s17, 64, %s1486_s12, %s520_s11  }
 0x31a PF: > { %s1572_s16 = sld [smem:[#allocation18_spill]]  ;;  %s588_s18 = sand.u32 1, %s1119_s27  }
 0x31b   : > { %p1574_p6 = scmp.ge.s32.totalorder %s1139_s10, 2  ;;  %s589_s3 = scalar_lea.sflag [#allocation4], %s588_s18 }
 0x320   : > { %p1573_p4 = scmp.ne.s32.totalorder %s1572_s16, 0 }
 0x322   : > { %p828_p8 = pnand %p1574_p6, %p1573_p4 }
 0x324   : > { %1106 = dma.done.wait (!%p828_p8), %s589_s3, 128  }
 0x325   : > { %1108 = vsyncadd (!%p828_p8), %s589_s3, 4294967168  ;;  %s1575_s25 = sadd.s32 4294967294, %s1139_s10  }
 0x326   : > { %s597_s30 = sand.u32 1, %s1575_s25  }
 0x327   : > { %s598_s21 = scalar_lea.sflag [#allocation9], %s597_s30 }
 0x328   : > { %1110 = dma.done.wait (!%p828_p8), %s598_s21, 128  }
 0x329   : > { %1112 = vsyncadd (!%p828_p8), %s598_s21, 4294967168  ;;  %s616_s26 = scalar_lea.sflag [#allocation12], %s588_s18 }
 0x32a   : > { %1114 = dma.done.wait (!%p828_p8), %s616_s26, 64  }
 0x32b   : > { %1116 = vsyncadd (!%p828_p8), %s616_s26, 4294967232  ;;  %s32_s10 = sadd.s32 1, %s1139_s10   ;;  %s1576_s17 = sld [smem:[#allocation19_spill]] }
 0x32c   : > { %p29_p10 = scmp.ge.s32.totalorder %s32_s10, 4   ;;  %s1577_s27 = smov %s1123_s28 }
 0x32d   : > { %s1578_s28 = smov %s1127_s29  ;;  %s1579_s29 = smov %s1301_s20 }
 0x32e   : > { %s1580_s30 = smov %s1135_s9  ;;  %31 = sbr.rel (!%p29_p10) target bundleno = 13 (0xd), region = 138 }
 0x331   : > { %s1581_s9 = smov %s1576_s17 }
 0x335   :  { %621 = vsyncpa [#allocation3], 1 }
 0x336   :  { %623 = vsyncpa [#allocation3 + $0x1], 1 }
 0x337   :  { %624 = vsyncpa [#allocation6], 1 }
 0x338   :  { %625 = vsyncpa [#allocation4], 1 }
 0x339   :  { %627 = vsyncpa [#allocation4 + $0x1], 1 }
 0x33a   :  { %628 = vsyncpa [#allocation9], 1 }
 0x33b   :  { %630 = vsyncpa [#allocation9 + $0x1], 1 }
 0x33c   :  { %631 = vsyncpa [#allocation12], 1 }
 0x33d   :  { %633 = vsyncpa [#allocation12 + $0x1], 1 }

</bundles_post_ra>
